<compile_context>
chip_gen: v6e
topology: v6e:2x2x1
jax: 0.10.0
libtpu: 0.0.40
codegen_flags: <defaults>
</compile_context>

<pallas_src>
import functools

import jax
import jax.numpy as jnp
from jax import lax
from jax.experimental import pallas as pl
from jax.experimental.pallas import tpu as pltpu


_VMEM_LIMIT = 64 * 1024 * 1024  # explicit scoped-VMEM budget (safe on v5e..v7x)


# ----------------------------------------------------------------------------
# helpers
# ----------------------------------------------------------------------------
def _sublane_align(dtype):
    """Rows per packed sublane group: f32 -> 8, bf16 -> 16, int8 -> 32."""
    return 8 * max(1, 4 // jnp.dtype(dtype).itemsize)


def _pick_tile(dim, target, align):
    """Tile <= target that is a multiple of `align`.

    Prefers an exact divisor of `dim` (no wasted edge work) but never shrinks
    below target/2: the grid uses pl.cdiv, so a non-divisor tile is legal and
    the edge block is simply masked.  This avoids the old tm->8 collapse for
    M = B*197."""
    if dim <= target:
        return dim
    target = max(align, (target // align) * align)
    t = target
    while t >= max(align, target // 2):
        if dim % t == 0:
            return t
        t -= align
    return target


# ----------------------------------------------------------------------------
# Kernel 1: dense layer  out = x @ w + b  (qkv and proj projections)
#   Whole-K block (no contraction grid axis, no accumulator scratch).
# ----------------------------------------------------------------------------
def _linear_kernel(x_ref, w_ref, b_ref, o_ref, *, mxu_dtype):
    x = x_ref[...]
    w = w_ref[...]
    if mxu_dtype is not None:
        x = x.astype(mxu_dtype)
        w = w.astype(mxu_dtype)
    acc = jnp.dot(x, w, preferred_element_type=jnp.float32)
    o_ref[...] = (acc + b_ref[...].astype(jnp.float32)).astype(o_ref.dtype)


def linear(x2d, w, b, *, tm=256, tn=512, mxu_dtype=None):
    """x2d: (M, K), w: (K, Nout), b: (1, Nout) -> (M, Nout)."""
    M, K = x2d.shape
    Nout = w.shape[1]
    tm = _pick_tile(M, tm, _sublane_align(x2d.dtype))   # MXU-friendly row tile
    tn = _pick_tile(Nout, tn, 128)                      # lane-aligned out tile
    grid = (pl.cdiv(M, tm), pl.cdiv(Nout, tn))

    kernel = functools.partial(_linear_kernel, mxu_dtype=mxu_dtype)
    return pl.pallas_call(
        kernel,
        out_shape=jax.ShapeDtypeStruct((M, Nout), x2d.dtype),
        grid=grid,
        in_specs=[
            pl.BlockSpec((tm, K), lambda i, j: (i, 0)),
            pl.BlockSpec((K, tn), lambda i, j: (0, j)),
            pl.BlockSpec((1, tn), lambda i, j: (0, j)),
        ],
        out_specs=pl.BlockSpec((tm, tn), lambda i, j: (i, j)),
        compiler_params=pltpu.CompilerParams(
            dimension_semantics=("parallel", "parallel"),
            vmem_limit_bytes=_VMEM_LIMIT,
        ),
    )(x2d, w, b)


# ----------------------------------------------------------------------------
# Kernel 2: multi-head attention over the lane-dense (B, N, 3C) qkv block
# ----------------------------------------------------------------------------
def _one_head(q, k, v, scale, mxu_dtype):
    """Single-head attention on (N, D) tiles.  Returns (ctx_f32, probs_f32)."""
    q = q * scale                                   # fold scale into q (N*D mul)
    if mxu_dtype is not None:
        q = q.astype(mxu_dtype)
        k = k.astype(mxu_dtype)
        v = v.astype(mxu_dtype)
    # q @ k^T without materializing a transpose: contract the last dims.
    s = lax.dot_general(q, k, (((1,), (1,)), ((), ())),
                        preferred_element_type=jnp.float32)       # (N, N) f32
    m = jnp.max(s, axis=-1, keepdims=True)
    e = jnp.exp(s - m)
    # approx reciprocal runs on the EUP slot; rows sum to 1 +- ~1e-3.
    p = e * pl.reciprocal(jnp.sum(e, axis=-1, keepdims=True), approx=True)
    pv = p.astype(mxu_dtype) if mxu_dtype is not None else p.astype(v.dtype)
    ctx = jnp.dot(pv, v, preferred_element_type=jnp.float32)      # (N, D) f32
    return ctx, p


def _mha_group_body(q_ref, k_ref, v_ref, ctx_ref, attn_ref, *,
                    scale, head_dim, group, mxu_dtype):
    """Grid step = one batch element x `group` heads (group*head_dim == 128)."""
    parts = []
    for i in range(group):                 # group is 1 or 2 -> tiny unroll
        sl = slice(i * head_dim, (i + 1) * head_dim)
        ctx, p = _one_head(q_ref[:, sl], k_ref[:, sl], v_ref[:, sl],
                           scale, mxu_dtype)
        if attn_ref is not None:
            attn_ref[i] = p.astype(attn_ref.dtype)
        parts.append(ctx)
    out = parts[0] if group == 1 else jnp.concatenate(parts, axis=-1)
    ctx_ref[...] = out.astype(ctx_ref.dtype)     # one lane-dense 128-wide store


def _mha_group_kernel_attn(q_ref, k_ref, v_ref, ctx_ref, attn_ref, **kw):
    _mha_group_body(q_ref, k_ref, v_ref, ctx_ref, attn_ref, **kw)


def _mha_group_kernel_noattn(q_ref, k_ref, v_ref, ctx_ref, **kw):
    _mha_group_body(q_ref, k_ref, v_ref, ctx_ref, None, **kw)


def _mha_full_body(qkv_ref, ctx_ref, attn_ref, *, scale, num_heads, head_dim,
                   dim, mxu_dtype):
    """Fallback for small / lane-unaligned head dims: one batch per step."""
    C, D = dim, head_dim
    parts = []
    for h in range(num_heads):
        lo = h * D
        ctx, p = _one_head(qkv_ref[:, lo:lo + D],
                           qkv_ref[:, C + lo:C + lo + D],
                           qkv_ref[:, 2 * C + lo:2 * C + lo + D],
                           scale, mxu_dtype)
        if attn_ref is not None:
            attn_ref[h] = p.astype(attn_ref.dtype)
        parts.append(ctx)
    ctx_ref[...] = jnp.concatenate(parts, axis=-1).astype(ctx_ref.dtype)


def _mha_full_kernel_attn(qkv_ref, ctx_ref, attn_ref, **kw):
    _mha_full_body(qkv_ref, ctx_ref, attn_ref, **kw)


def _mha_full_kernel_noattn(qkv_ref, ctx_ref, **kw):
    _mha_full_body(qkv_ref, ctx_ref, None, **kw)


def multihead_attention(qkv3, scale, num_heads, head_dim, *, return_attn,
                        mxu_dtype=None, attn_dtype=None):
    """qkv3: (B, N, 3C) -> ctx (B, N, C) [, attn (B, H, N, N)]."""
    B, N, C3 = qkv3.shape
    C = C3 // 3
    H, D = num_heads, head_dim
    if attn_dtype is None:
        attn_dtype = qkv3.dtype

    ctx_shape = jax.ShapeDtypeStruct((B, N, C), qkv3.dtype)
    attn_shape = jax.ShapeDtypeStruct((B, H, N, N), attn_dtype)

    # Pick a lane-aligned heads-per-step group so every q/k/v/ctx block is a
    # multiple of 128 lanes wide (D=64 -> pairs of heads, D=128 -> one head).
    group = None
    if D % 128 == 0:
        group = 1
    elif 128 % D == 0 and H % (128 // D) == 0 and C % 128 == 0:
        group = 128 // D

    if group is not None:
        ng = H // group                 # grid extent over head groups
        gd = group * D                  # 128-lane-wide chunk
        q_spec = pl.BlockSpec((None, N, gd), lambda b, g: (b, 0, g))
        k_spec = pl.BlockSpec((None, N, gd), lambda b, g: (b, 0, ng + g))
        v_spec = pl.BlockSpec((None, N, gd), lambda b, g: (b, 0, 2 * ng + g))
        ctx_spec = pl.BlockSpec((None, N, gd), lambda b, g: (b, 0, g))
        kw = dict(scale=scale, head_dim=D, group=group, mxu_dtype=mxu_dtype)
        if return_attn:
            kernel = functools.partial(_mha_group_kernel_attn, **kw)
            out_shape = (ctx_shape, attn_shape)
            out_specs = (ctx_spec,
                         pl.BlockSpec((None, group, N, N),
                                      lambda b, g: (b, g, 0, 0)))
        else:
            kernel = functools.partial(_mha_group_kernel_noattn, **kw)
            out_shape = ctx_shape
            out_specs = ctx_spec
        return pl.pallas_call(
            kernel,
            grid=(B, ng),
            in_specs=[q_spec, k_spec, v_spec],
            out_shape=out_shape,
            out_specs=out_specs,
            compiler_params=pltpu.CompilerParams(
                dimension_semantics=("parallel", "parallel"),
                vmem_limit_bytes=_VMEM_LIMIT,
            ),
        )(qkv3, qkv3, qkv3)

    # ---- fallback: small / unaligned head dims (e.g. the demo shapes) ----
    qkv_spec = pl.BlockSpec((None, N, C3), lambda b: (b, 0, 0))
    ctx_spec = pl.BlockSpec((None, N, C), lambda b: (b, 0, 0))
    kw = dict(scale=scale, num_heads=H, head_dim=D, dim=C, mxu_dtype=mxu_dtype)
    if return_attn:
        kernel = functools.partial(_mha_full_kernel_attn, **kw)
        out_shape = (ctx_shape, attn_shape)
        out_specs = (ctx_spec,
                     pl.BlockSpec((None, H, N, N), lambda b: (b, 0, 0, 0)))
    else:
        kernel = functools.partial(_mha_full_kernel_noattn, **kw)
        out_shape = ctx_shape
        out_specs = ctx_spec
    return pl.pallas_call(
        kernel,
        grid=(B,),
        in_specs=[qkv_spec],
        out_shape=out_shape,
        out_specs=out_specs,
        compiler_params=pltpu.CompilerParams(
            dimension_semantics=("parallel",),
            vmem_limit_bytes=_VMEM_LIMIT,
        ),
    )(qkv3)


# ----------------------------------------------------------------------------
# Full Attention module forward
# ----------------------------------------------------------------------------
def attention_forward(x, params, num_heads, *, return_attn=True,
                      mxu_dtype=None, attn_dtype=None):
    """x: (B, N, C) -> (y (B, N, C), attn (B, H, N, N)) [or just y]."""
    B, N, C = x.shape
    H = num_heads
    assert C % H == 0
    D = C // H
    scale = float(D) ** -0.5

    x2d = x.reshape(B * N, C)

    # qkv projection (qkv_bias=False -> zero bias).  Reshape to (B, N, 3C) is
    # free (same row-major memory); no HBM transpose anywhere in the module.
    qkv = linear(x2d, params["w_qkv"], params["b_qkv"], mxu_dtype=mxu_dtype)
    qkv3 = qkv.reshape(B, N, 3 * C)

    if return_attn:
        ctx, attn = multihead_attention(qkv3, scale, H, D, return_attn=True,
                                        mxu_dtype=mxu_dtype,
                                        attn_dtype=attn_dtype)
    else:
        ctx = multihead_attention(qkv3, scale, H, D, return_attn=False,
                                  mxu_dtype=mxu_dtype)
        attn = None

    # ctx is already lane-dense (B, N, C) -- no transpose before proj.
    y = linear(ctx.reshape(B * N, C), params["w_proj"], params["b_proj"],
               mxu_dtype=mxu_dtype)
    y = y.reshape(B, N, C)

    if return_attn:
        return y, attn
    return y


def init_params(key, dim):
    k1, k2, k3 = jax.random.split(key, 3)
    std = 0.02
    return {
        # stored as (in, out) so the kernel computes x @ w directly
        "w_qkv": jax.random.normal(k1, (dim, dim * 3), jnp.float32) * std,
        "b_qkv": jnp.zeros((1, dim * 3), jnp.float32),   # qkv_bias=False
        "w_proj": jax.random.normal(k2, (dim, dim), jnp.float32) * std,
        "b_proj": jax.random.normal(k3, (1, dim), jnp.float32) * std,
    }


# ----------------------------------------------------------------------------
# Pure-JAX reference for sanity checks
# ----------------------------------------------------------------------------
def attention_reference(x, params, num_heads):
    B, N, C = x.shape
    H = num_heads
    D = C // H
    scale = float(D) ** -0.5
    qkv = x @ params["w_qkv"] + params["b_qkv"]
    qkv = qkv.reshape(B, N, 3, H, D).transpose(2, 0, 3, 1, 4)
    q, k, v = qkv[0], qkv[1], qkv[2]
    s = jnp.einsum("bhqd,bhkd->bhqk", q, k) * scale
    attn = jax.nn.softmax(s, axis=-1)
    ctx = jnp.einsum("bhqk,bhkd->bhqd", attn, v)
    ctx = ctx.transpose(0, 2, 1, 3).reshape(B, N, C)
    y = ctx @ params["w_proj"] + params["b_proj"]
    return y, attn


if __name__ == "__main__":
    def check(B, N, C, H, *, mxu_dtype=None, atol=5e-3, rtol=5e-3,
              check_attn=True, tag=""):
        key = jax.random.PRNGKey(0)
        kx, kp = jax.random.split(key)
        x = jax.random.normal(kx, (B, N, C), jnp.float32)
        params = init_params(kp, C)

        y, attn = attention_forward(x, params, H, return_attn=True,
                                    mxu_dtype=mxu_dtype)
        y, attn = jax.block_until_ready((y, attn))

        # fast path that skips the (B, H, N, N) HBM writeback entirely
        y_fast = jax.block_until_ready(
            attention_forward(x, params, H, return_attn=False,
                              mxu_dtype=mxu_dtype))

        y_ref, attn_ref = attention_reference(x, params, H)
        assert jnp.allclose(y, y_ref, atol=atol, rtol=rtol), f"{tag}: y mismatch"
        if check_attn:
            assert jnp.allclose(attn, attn_ref, atol=atol, rtol=rtol), \
                f"{tag}: attn mismatch"
        assert jnp.allclose(y_fast, y_ref, atol=atol, rtol=rtol), \
            f"{tag}: fast-path mismatch"

    # small shapes consistent with the module defaults (num_heads=8):
    # exercises the fallback (lane-unaligned head_dim=4) path.
    check(2, 8, 32, 8, tag="small")
    # lane-aligned grouped path (head_dim=64 -> 2 heads / 128 lanes per step).
    check(2, 16, 128, 2, tag="grouped")
    # bf16-on-MXU variant of the grouped path (looser tolerance).
    check(2, 16, 128, 2, mxu_dtype=jnp.bfloat16, atol=3e-2, rtol=3e-2,
          tag="grouped-bf16")

    print("KERNEL_OK")
</pallas_src>

<mosaic_0001>
module attributes {stable_mosaic.version = 11 : i64} {
  func.func @_linear_kernel(%arg0: i32, %arg1: i32, %arg2: memref<16x32xf32, #tpu.memory_space<vmem>>, %arg3: memref<32x96xf32, #tpu.memory_space<vmem>>, %arg4: memref<1x96xf32, #tpu.memory_space<vmem>>, %arg5: memref<16x96xf32, #tpu.memory_space<vmem>>) attributes {dimension_semantics = [#tpu.dimension_semantics<parallel>, #tpu.dimension_semantics<parallel>], iteration_bounds = array<i64: 1, 1>, scalar_prefetch = 0 : i64, scratch_operands = 0 : i64, tpu.core_type = #tpu.core_type<tc>, window_params = [{transform_indices = @transform_0, window_bounds = array<i64: 16, 32>}, {transform_indices = @transform_1, window_bounds = array<i64: 32, 96>}, {transform_indices = @transform_2, window_bounds = array<i64: 1, 96>}, {transform_indices = @transform_3, window_bounds = array<i64: 16, 96>}]} {
    %c0 = arith.constant 0 : index
    %c0_0 = arith.constant 0 : index
    %0 = vector.load %arg2[%c0, %c0_0] : memref<16x32xf32, #tpu.memory_space<vmem>>, vector<16x32xf32>
    %c0_1 = arith.constant 0 : index
    %c0_2 = arith.constant 0 : index
    %1 = vector.load %arg3[%c0_1, %c0_2] : memref<32x96xf32, #tpu.memory_space<vmem>>, vector<32x96xf32>
    %cst = arith.constant dense<0.000000e+00> : vector<16x96xf32>
    %2 = tpu.matmul %0, %1, %cst {dimension_numbers = #tpu.dot_dimension_numbers<[1], [0], [0], [1], [0, 0, 1, 1], [], []>} : vector<16x32xf32>, vector<32x96xf32>, vector<16x96xf32> -> vector<16x96xf32>
    %c0_3 = arith.constant 0 : index
    %c0_4 = arith.constant 0 : index
    %3 = vector.load %arg4[%c0_3, %c0_4] : memref<1x96xf32, #tpu.memory_space<vmem>>, vector<1x96xf32>
    %4 = vector.broadcast %3 : vector<1x96xf32> to vector<16x96xf32>
    %5 = arith.addf %2, %4 : vector<16x96xf32>
    %c0_5 = arith.constant 0 : index
    %c0_6 = arith.constant 0 : index
    %6 = vector.load %arg5[%c0_5, %c0_6] : memref<16x96xf32, #tpu.memory_space<vmem>>, vector<16x96xf32>
    tpu.vector_store %arg5[%c0_5, %c0_6], %5 {strides = array<i32>} : memref<16x96xf32, #tpu.memory_space<vmem>>, vector<16x96xf32>,
    return
  }
  func.func @transform_0(%arg0: i32, %arg1: i32) -> (i32, i32) {
    %c0_i32 = arith.constant 0 : i32
    %c0_i32_0 = arith.constant 0 : i32
    return %arg0, %c0_i32 : i32, i32
  }
  func.func @transform_1(%arg0: i32, %arg1: i32) -> (i32, i32) {
    %c0_i32 = arith.constant 0 : i32
    %c0_i32_0 = arith.constant 0 : i32
    return %c0_i32, %arg1 : i32, i32
  }
  func.func @transform_2(%arg0: i32, %arg1: i32) -> (i32, i32) {
    %c0_i32 = arith.constant 0 : i32
    %c0_i32_0 = arith.constant 0 : i32
    return %c0_i32, %arg1 : i32, i32
  }
  func.func @transform_3(%arg0: i32, %arg1: i32) -> (i32, i32) {
    %c0_i32 = arith.constant 0 : i32
    return %arg0, %arg1 : i32, i32
  }
}

</mosaic_0001>

<bundles_post_ra>
// kernel: tpu_custom_call.1
= control target key start
LH: loop header
LB: loop body
LE: loop exit
PB: predicated region body
PF: predicated region fallthrough
CT: control target
= control target key end

     0   :  { %8 = vsyncpa [#allocation3], 0  ;;  %s298_s0 = inlined_call_operand.hbm [shape: f32[16,32], index: 0, kind: input, shape index: {}]   ;;  %s299_s1 = inlined_call_operand.hbm [shape: f32[32,96], index: 1, kind: input, shape index: {}]   ;;  %s300_s2 = inlined_call_operand.vmem [shape: f32[1,96], index: 2, kind: input, shape index: {}]   ;;  %s301_s3 = inlined_call_operand.hbm [shape: f32[16,96], index: 3, kind: output, shape index: {}]  }
   0x1   :  { %9 = vsyncpa [#allocation6], 0 }
   0x2   :  { %10 = vsyncpa [#allocation4], 0  ;;  %s250_s12 = smov [#allocation2]  }
   0x3   :  { %s16_s13 = sshll.u32 %s250_s12, 4  ;;  %s17_s13 = int_to_ptr.vmem [resolvable:$true] %s16_s13 }
   0x4   :  { %s192_s14 = scalar_lea.vmem %s17_s13, 256  ;;  %p197_p1 = scmp.lt.s32.totalorder %s17_s13, %s17_s13 }
   0x5   :  { %p193_p0 = scmp.ne.s32.totalorder %s17_s13, %s192_s14  ;;  %p198_p2 = scmp.lt.s32.totalorder %s192_s14, %s192_s14 }
   0x7   :  { %p199_p3 = por %p198_p2, %p197_p1 }
   0x9   :  { %p200_p4 = pnand %p199_p3, %p193_p0 }
   0xb   :  { %203 = shalt.err (!%p200_p4)
}
   0xc   :  { %s251_s15 = smov 128   ;;  %s252_s16 = smov 8  }
   0xd   :  { %22 = dma.hbm_to_vmem [thread:$0]  %s298_s0, 256, %s17_s13, [#allocation3], %s251_s15, %s251_s15, %s252_s16  }
   0xe   :  { %s253_s19 = smov [#allocation5]  }
   0xf   :  { %s28_s20 = sshll.u32 %s253_s19, 4  ;;  %s29_s20 = int_to_ptr.vmem [resolvable:$true] %s28_s20 }
  0x10   :  { %s212_s21 = scalar_lea.vmem %s29_s20, 512  ;;  %p217_p6 = scmp.lt.s32.totalorder %s29_s20, %s29_s20 }
  0x11   :  { %p213_p5 = scmp.ne.s32.totalorder %s29_s20, %s212_s21  ;;  %p218_p7 = scmp.lt.s32.totalorder %s212_s21, %s212_s21 }
  0x13   :  { %p219_p8 = por %p218_p7, %p217_p6 }
  0x15   :  { %p220_p9 = pnand %p219_p8, %p213_p5 }
  0x17   :  { %223 = shalt.err (!%p220_p9)
}
  0x18   :  { %34 = dma.hbm_to_vmem [thread:$0]  %s299_s1, 512, %s29_s20, [#allocation6], %s251_s15, %s251_s15, %s252_s16  }
  0x19   :  { %244 = dma.done.wait [#allocation3], 256  }
  0x1a   :  { %245 = vsyncadd [#allocation3], 4294967040 }
  0x1b   :  { %246 = dma.done.wait [#allocation6], 512  }
  0x1c   :  { %247 = vsyncadd [#allocation6], 4294966784  ;;  %vm56_vm0 = vcmask 261120   ;;  %v48_v0 = vld [vmem:[#allocation5 + $0x18] sm:$0xff]  ;;  %v47_v1 = vld [vmem:[#allocation5 + $0x10] sm:$0xff]  ;;  %vm138_vm1 = vcmask 785408  }
  0x1d   :  { %168 = vmatprep.subr.mxu0 %v48_v0  ;;  %v43_v2 = vld [vmem:[#allocation2] sm:$0xff]  ;;  %v46_v3 = vld [vmem:[#allocation5 + $0x8] sm:$0xff]  ;;  %v45_v4 = vld [vmem:[#allocation5] sm:$0xff]  ;;  %s254_s24 = smov [#allocation7]  }
  0x1e   :  { %169 = vmatpush3.msra.mxu0 %v48_v0  ;;  %176 = vmatprep.mubr.msk.f32.mxu0 %vm56_vm0, %v43_v2  ;;  %v44_v5 = vld [vmem:[#allocation2 + $0x8] sm:$0xff]  ;;  %v159_v6 = vld [vmem:[%s300_s2] ss:$0 sm:$0xff]  ;;  %s146_s25 = sshll.u32 %s254_s24, 4  ;;  %s147_s25 = int_to_ptr.vmem [resolvable:$true] %s146_s25 }
  0x1f   :  { %170 = vmatprep.subr.mxu0 %v47_v1  ;;  %s224_s26 = scalar_lea.vmem %s147_s25, 256  ;;  %p229_p11 = scmp.lt.s32.totalorder %s147_s25, %s147_s25 }
  0x20   :  { %171 = vmatpush3.msra.mxu0 %v47_v1  ;;  %p225_p10 = scmp.ne.s32.totalorder %s147_s25, %s224_s26  ;;  %p230_p12 = scmp.lt.s32.totalorder %s224_s26, %s224_s26 }
  0x21   :  { %172 = vmatprep.subr.mxu0 %v46_v3 }
  0x22   :  { %173 = vmatpush3.msra.mxu0 %v46_v3  ;;  %p231_p13 = por %p230_p12, %p229_p11 }
  0x23   :  { %174 = vmatprep.subr.mxu0 %v45_v4 }
  0x24   :  { %175 = vmatpush3.msra.mxu0 %v45_v4  ;;  %p232_p0 = pnand %p231_p13, %p225_p10 }
  0x25   :  { %177 = vmatmul.mubr.msk.f32.vlgmr.msra.gmra.mxu0 %vm56_vm0, %v44_v5 }
  0xe5   :  { %v178_v7 = vpop.f32.mrf.mxu0 }
  0xe6   :  { %v135_v8 = vadd.f32 %v178_v7, %v159_v6 }
  0xe7   :  { %v129_v9 = vpop.f32.mrf.mxu0 }
  0xe8   :  { %v130_v10 = vadd.f32 %v159_v6, %v129_v9  ;;  %140 = vst.msk [vmem:[#allocation7 + $0x8] sm:$0xff] %vm138_vm1, %v135_v8 }
  0xea   :  { %139 = vst.msk [vmem:[#allocation7] sm:$0xff] %vm138_vm1, %v130_v10 }
  0xeb   :  { %235 = shalt.err (!%p232_p0)
}
  0xec   :  { %152 = dma.vmem_to_hbm [thread:$0]  %s147_s25, 256, %s301_s3, [#allocation4], %s251_s15, %s251_s15, %s252_s16  }
  0xed   :  { %248 = dma.done.wait [#allocation4], 256  }
  0xee   :  { %249 = vsyncadd [#allocation4], 4294967040 }
  0xef   :  { %156 = vsyncpa [#allocation3], 1 }
  0xf0   :  { %157 = vsyncpa [#allocation6], 1 }
  0xf1   :  { %158 = vsyncpa [#allocation4], 1 }

</bundles_post_ra>
